<compile_context>
chip_gen: v6e
topology: v6e:2x2x1
jax: 0.10.0
libtpu: 0.0.40
codegen_flags: <defaults>
</compile_context>

<pallas_src>
import jax
import jax.numpy as jnp
from jax.experimental import pallas as pl
from jax.experimental.pallas import tpu as pltpu


def _make_conv3x3_kernel(W, L0, compute_dtype):
    def kernel(x_ref, w_ref, m_ref, o_ref):
        # x_ref: (1, Cin, L0)        flattened (H*W) image of one batch element
        # w_ref: (9, Cout_blk, Cin)  per-tap weights, tap = 3*kh + kw
        # m_ref: (9, 1, L0)          {0,1} boundary masks per tap
        # o_ref: (1, Cout_blk, L0)
        x = x_ref[0].astype(compute_dtype)          # (Cin, L0)

        acc = None
        for kh in range(3):
            for kw in range(3):
                tap = 3 * kh + kw
                shift = (kh - 1) * W + (kw - 1)     # flat offset of this tap
                if shift == 0:
                    rhs = x
                else:
                    # XLU lane rotation: rhs[p] = x[(p + shift) mod L0]
                    rhs = pltpu.roll(x, shift=(-shift) % L0, axis=1)
                if tap != 4:
                    # Zero contributions that crossed an image border
                    # (row/col bleed of the flat roll). VPU multiply, cheap.
                    rhs = rhs * m_ref[tap]
                contrib = jnp.dot(w_ref[tap], rhs,
                                  preferred_element_type=jnp.float32)
                acc = contrib if acc is None else acc + contrib

        o_ref[0] = acc.astype(o_ref.dtype)

    return kernel


def _boundary_masks(H, W, dtype):
    """(9, 1, H*W) {0,1} masks: mask[3*kh+kw, 0, p] == tap (kh,kw) is in-bounds."""
    row = jnp.repeat(jnp.arange(H, dtype=jnp.int32), W)    # (H*W,)
    col = jnp.tile(jnp.arange(W, dtype=jnp.int32), H)      # (H*W,)
    ones = jnp.ones((H * W,), dtype=jnp.bool_)
    row_ok = [row >= 1, ones, row <= H - 2]
    col_ok = [col >= 1, ones, col <= W - 2]
    masks = [row_ok[kh] & col_ok[kw] for kh in range(3) for kw in range(3)]
    return jnp.stack(masks).astype(dtype).reshape(9, 1, H * W)


def _choose_cout_block(B, Cin, Cout, L0, in_itemsize, cd_itemsize, budget):
    """Pick an (8,128)-legal Cout block that fits the per-step VMEM budget."""
    def est(co):
        inp = 2 * Cin * L0 * in_itemsize            # double-buffered input block
        wgt = 2 * 9 * co * Cin * cd_itemsize        # weight block
        msk = 2 * 9 * L0 * cd_itemsize              # boundary masks
        out = 2 * co * L0 * in_itemsize             # double-buffered output block
        acc = co * L0 * 4                           # f32 accumulator (live value)
        tmp = 2 * Cin * L0 * max(cd_itemsize, 4)    # rolled / masked tap temps
        return inp + wgt + msk + out + acc + tmp

    # Legal blocks: the full Cout, or divisors of Cout that are multiples of 8
    # (keeps the second-to-last dim of the weight/output blocks (8,128)-legal).
    cands = [d for d in range(1, Cout + 1)
             if Cout % d == 0 and (d == Cout or d % 8 == 0)]
    cands.sort(reverse=True)
    fitting = [d for d in cands if est(d) <= budget] or [cands[-1]]
    co = fitting[0]
    if B == 1:
        # Prefer >= 2 parallel grid steps so both v7x TensorCores get work.
        smaller = [d for d in fitting if d < Cout]
        if smaller:
            co = smaller[0]
    return co, est(co)


def perceiver_forward(x_nchw, weight_oihw, groups=1, mxu_dtype=None,
                      vmem_budget_bytes=12 * 1024 * 1024):
    """Forward of Perceiver: Conv2d(Cin, Cout, 3, stride=1, padding=1, bias=False).

    x_nchw:      (B, Cin, H, W)    -- PyTorch layout
    weight_oihw: (Cout, Cin, 3, 3) -- PyTorch conv weight layout
    mxu_dtype:   optional MXU operand dtype (e.g. jnp.bfloat16 for v6e/v7x).
    returns:     (B, Cout, H, W)
    """
    assert groups == 1, "TODO(synk): grouped conv not implemented"
    B, Cin, H, W = x_nchw.shape
    Cout, Cin_w, KH, KW = weight_oihw.shape
    assert (KH, KW) == (3, 3) and Cin_w == Cin

    L0 = H * W
    compute_dtype = jnp.dtype(mxu_dtype) if mxu_dtype is not None else x_nchw.dtype

    # Flatten spatial dims: contiguous reshape -> free, no extra HBM pass.
    x_flat = x_nchw.reshape(B, Cin, L0)

    # (Cout, Cin, 3, 3) -> (3, 3, Cout, Cin) -> (9, Cout, Cin); cast once here.
    w_taps = jnp.transpose(weight_oihw, (2, 3, 0, 1)).reshape(9, Cout, Cin)
    w_taps = w_taps.astype(compute_dtype)

    masks = _boundary_masks(H, W, compute_dtype)            # (9, 1, L0)

    in_itemsize = jnp.dtype(x_nchw.dtype).itemsize
    cd_itemsize = jnp.dtype(compute_dtype).itemsize
    co_blk, vmem_est = _choose_cout_block(
        B, Cin, Cout, L0, in_itemsize, cd_itemsize, vmem_budget_bytes)
    n_co = Cout // co_blk

    kernel = _make_conv3x3_kernel(W, L0, compute_dtype)

    flops = 2 * B * 9 * Cin * Cout * L0
    bytes_accessed = (x_flat.size * in_itemsize * n_co
                      + w_taps.size * cd_itemsize
                      + masks.size * cd_itemsize
                      + B * Cout * L0 * in_itemsize)
    # Explicit scoped-VMEM limit (>= v6e/v7x default, safe for v7x's 64 MiB).
    vmem_limit = int(min(max(2 * vmem_est, 32 << 20), 40 << 20))

    out_flat = pl.pallas_call(
        kernel,
        out_shape=jax.ShapeDtypeStruct((B, Cout, L0), x_nchw.dtype),
        grid_spec=pltpu.PrefetchScalarGridSpec(
            num_scalar_prefetch=0,
            grid=(B, n_co),
            in_specs=[
                # One flattened image per batch element.
                pl.BlockSpec((1, Cin, L0), lambda b, co: (b, 0, 0)),
                # Per-tap weights, blocked along Cout; constant over b.
                pl.BlockSpec((9, co_blk, Cin), lambda b, co: (0, co, 0)),
                # Boundary masks: constant index_map -> resident across grid.
                pl.BlockSpec((9, 1, L0), lambda b, co: (0, 0, 0)),
            ],
            out_specs=pl.BlockSpec((1, co_blk, L0), lambda b, co: (b, co, 0)),
        ),
        compiler_params=pltpu.CompilerParams(
            dimension_semantics=("parallel", "parallel"),
            vmem_limit_bytes=vmem_limit),
        cost_estimate=pl.CostEstimate(
            flops=flops, transcendentals=0, bytes_accessed=bytes_accessed),
    )(x_flat, w_taps, masks)

    # Flattened spatial dim back to (H, W): pure reshape, no transpose.
    return out_flat.reshape(B, Cout, H, W)


def _reference_conv(x, weight):
    return jax.lax.conv_general_dilated(
        x, weight, window_strides=(1, 1), padding=((1, 1), (1, 1)),
        dimension_numbers=("NCHW", "OIHW", "NCHW"))


if __name__ == "__main__":
    key = jax.random.PRNGKey(0)
    k1, k2, k3, k4 = jax.random.split(key, 4)

    # Spec-sized test: B=2, Cin=4, Cout=8, 16x16 (H*W = 256 -> lane-dense).
    B, Cin, Cout, H, W = 2, 4, 8, 16, 16
    x = jax.random.normal(k1, (B, Cin, H, W), dtype=jnp.float32)
    w = jax.random.normal(k2, (Cout, Cin, 3, 3), dtype=jnp.float32) * 0.1
    y = jax.block_until_ready(perceiver_forward(x, w))
    y_ref = _reference_conv(x, w)
    assert y.shape == (B, Cout, H, W)
    assert jnp.allclose(y, y_ref, atol=2e-4, rtol=2e-4), \
        float(jnp.max(jnp.abs(y - y_ref)))

    # B=1, Cout=16: exercises the Cout-split grid axis (2 parallel grid steps,
    # keeps both v7x TensorCores busy) and a non-power-of-two Cin.
    B2, Cin2, Cout2, H2, W2 = 1, 3, 16, 8, 16
    x2 = jax.random.normal(k3, (B2, Cin2, H2, W2), dtype=jnp.float32)
    w2 = jax.random.normal(k4, (Cout2, Cin2, 3, 3), dtype=jnp.float32) * 0.1
    y2 = jax.block_until_ready(perceiver_forward(x2, w2))
    y2_ref = _reference_conv(x2, w2)
    assert jnp.allclose(y2, y2_ref, atol=2e-4, rtol=2e-4), \
        float(jnp.max(jnp.abs(y2 - y2_ref)))

    print("KERNEL_OK")
</pallas_src>

<mosaic_0001>
module attributes {stable_mosaic.version = 11 : i64} {
  func.func @kernel(%arg0: i32, %arg1: i32, %arg2: memref<1x4x256xf32, #tpu.memory_space<vmem>>, %arg3: memref<9x8x4xf32, #tpu.memory_space<vmem>>, %arg4: memref<9x1x256xf32, #tpu.memory_space<vmem>>, %arg5: memref<1x8x256xf32, #tpu.memory_space<vmem>>) attributes {dimension_semantics = [#tpu.dimension_semantics<parallel>, #tpu.dimension_semantics<parallel>], iteration_bounds = array<i64: 2, 1>, scalar_prefetch = 0 : i64, scratch_operands = 0 : i64, tpu.core_type = #tpu.core_type<tc>, window_params = [{transform_indices = @transform_0, window_bounds = array<i64: 1, 4, 256>}, {transform_indices = @transform_1, window_bounds = array<i64: 9, 8, 4>}, {pipeline_mode = #tpu.pipeline_mode<synchronous>, transform_indices = @transform_2, window_bounds = array<i64: 9, 1, 256>}, {transform_indices = @transform_3, window_bounds = array<i64: 1, 8, 256>}]} {
    %c0 = arith.constant 0 : index
    %c0_0 = arith.constant 0 : index
    %c0_1 = arith.constant 0 : index
    %0 = vector.load %arg2[%c0, %c0_0, %c0_1] : memref<1x4x256xf32, #tpu.memory_space<vmem>>, vector<1x4x256xf32>
    %1 = vector.shape_cast %0 : vector<1x4x256xf32> to vector<4x256xf32>
    %c17_i32 = arith.constant 17 : i32
    %2 = tpu.dynamic_rotate %1 by %c17_i32 dim 1 : vector<4x256xf32>, i32 -> vector<4x256xf32>
    %c0_2 = arith.constant 0 : index
    %c0_3 = arith.constant 0 : index
    %c0_4 = arith.constant 0 : index
    %3 = vector.load %arg4[%c0_2, %c0_3, %c0_4] : memref<9x1x256xf32, #tpu.memory_space<vmem>>, vector<1x1x256xf32>
    %4 = vector.shape_cast %3 : vector<1x1x256xf32> to vector<1x256xf32>
    %5 = vector.broadcast %4 : vector<1x256xf32> to vector<4x256xf32>
    %6 = arith.mulf %2, %5 : vector<4x256xf32>
    %c0_5 = arith.constant 0 : index
    %c0_6 = arith.constant 0 : index
    %c0_7 = arith.constant 0 : index
    %7 = vector.load %arg3[%c0_5, %c0_6, %c0_7] : memref<9x8x4xf32, #tpu.memory_space<vmem>>, vector<1x8x4xf32>
    %8 = vector.shape_cast %7 : vector<1x8x4xf32> to vector<8x4xf32>
    %cst = arith.constant dense<0.000000e+00> : vector<8x256xf32>
    %9 = tpu.matmul %8, %6, %cst {dimension_numbers = #tpu.dot_dimension_numbers<[1], [0], [0], [1], [0, 0, 1, 1], [], []>} : vector<8x4xf32>, vector<4x256xf32>, vector<8x256xf32> -> vector<8x256xf32>
    %c16_i32 = arith.constant 16 : i32
    %10 = tpu.dynamic_rotate %1 by %c16_i32 dim 1 : vector<4x256xf32>, i32 -> vector<4x256xf32>
    %c1 = arith.constant 1 : index
    %c0_8 = arith.constant 0 : index
    %c0_9 = arith.constant 0 : index
    %11 = vector.load %arg4[%c1, %c0_8, %c0_9] : memref<9x1x256xf32, #tpu.memory_space<vmem>>, vector<1x1x256xf32>
    %12 = vector.shape_cast %11 : vector<1x1x256xf32> to vector<1x256xf32>
    %13 = vector.broadcast %12 : vector<1x256xf32> to vector<4x256xf32>
    %14 = arith.mulf %10, %13 : vector<4x256xf32>
    %c1_10 = arith.constant 1 : index
    %c0_11 = arith.constant 0 : index
    %c0_12 = arith.constant 0 : index
    %15 = vector.load %arg3[%c1_10, %c0_11, %c0_12] : memref<9x8x4xf32, #tpu.memory_space<vmem>>, vector<1x8x4xf32>
    %16 = vector.shape_cast %15 : vector<1x8x4xf32> to vector<8x4xf32>
    %cst_13 = arith.constant dense<0.000000e+00> : vector<8x256xf32>
    %17 = tpu.matmul %16, %14, %cst_13 {dimension_numbers = #tpu.dot_dimension_numbers<[1], [0], [0], [1], [0, 0, 1, 1], [], []>} : vector<8x4xf32>, vector<4x256xf32>, vector<8x256xf32> -> vector<8x256xf32>
    %18 = arith.addf %9, %17 : vector<8x256xf32>
    %c15_i32 = arith.constant 15 : i32
    %19 = tpu.dynamic_rotate %1 by %c15_i32 dim 1 : vector<4x256xf32>, i32 -> vector<4x256xf32>
    %c2 = arith.constant 2 : index
    %c0_14 = arith.constant 0 : index
    %c0_15 = arith.constant 0 : index
    %20 = vector.load %arg4[%c2, %c0_14, %c0_15] : memref<9x1x256xf32, #tpu.memory_space<vmem>>, vector<1x1x256xf32>
    %21 = vector.shape_cast %20 : vector<1x1x256xf32> to vector<1x256xf32>
    %22 = vector.broadcast %21 : vector<1x256xf32> to vector<4x256xf32>
    %23 = arith.mulf %19, %22 : vector<4x256xf32>
    %c2_16 = arith.constant 2 : index
    %c0_17 = arith.constant 0 : index
    %c0_18 = arith.constant 0 : index
    %24 = vector.load %arg3[%c2_16, %c0_17, %c0_18] : memref<9x8x4xf32, #tpu.memory_space<vmem>>, vector<1x8x4xf32>
    %25 = vector.shape_cast %24 : vector<1x8x4xf32> to vector<8x4xf32>
    %cst_19 = arith.constant dense<0.000000e+00> : vector<8x256xf32>
    %26 = tpu.matmul %25, %23, %cst_19 {dimension_numbers = #tpu.dot_dimension_numbers<[1], [0], [0], [1], [0, 0, 1, 1], [], []>} : vector<8x4xf32>, vector<4x256xf32>, vector<8x256xf32> -> vector<8x256xf32>
    %27 = arith.addf %18, %26 : vector<8x256xf32>
    %c1_i32 = arith.constant 1 : i32
    %28 = tpu.dynamic_rotate %1 by %c1_i32 dim 1 : vector<4x256xf32>, i32 -> vector<4x256xf32>
    %c3 = arith.constant 3 : index
    %c0_20 = arith.constant 0 : index
    %c0_21 = arith.constant 0 : index
    %29 = vector.load %arg4[%c3, %c0_20, %c0_21] : memref<9x1x256xf32, #tpu.memory_space<vmem>>, vector<1x1x256xf32>
    %30 = vector.shape_cast %29 : vector<1x1x256xf32> to vector<1x256xf32>
    %31 = vector.broadcast %30 : vector<1x256xf32> to vector<4x256xf32>
    %32 = arith.mulf %28, %31 : vector<4x256xf32>
    %c3_22 = arith.constant 3 : index
    %c0_23 = arith.constant 0 : index
    %c0_24 = arith.constant 0 : index
    %33 = vector.load %arg3[%c3_22, %c0_23, %c0_24] : memref<9x8x4xf32, #tpu.memory_space<vmem>>, vector<1x8x4xf32>
    %34 = vector.shape_cast %33 : vector<1x8x4xf32> to vector<8x4xf32>
    %cst_25 = arith.constant dense<0.000000e+00> : vector<8x256xf32>
    %35 = tpu.matmul %34, %32, %cst_25 {dimension_numbers = #tpu.dot_dimension_numbers<[1], [0], [0], [1], [0, 0, 1, 1], [], []>} : vector<8x4xf32>, vector<4x256xf32>, vector<8x256xf32> -> vector<8x256xf32>
    %36 = arith.addf %27, %35 : vector<8x256xf32>
    %c4 = arith.constant 4 : index
    %c0_26 = arith.constant 0 : index
    %c0_27 = arith.constant 0 : index
    %37 = vector.load %arg3[%c4, %c0_26, %c0_27] : memref<9x8x4xf32, #tpu.memory_space<vmem>>, vector<1x8x4xf32>
    %38 = vector.shape_cast %37 : vector<1x8x4xf32> to vector<8x4xf32>
    %cst_28 = arith.constant dense<0.000000e+00> : vector<8x256xf32>
    %39 = tpu.matmul %38, %1, %cst_28 {dimension_numbers = #tpu.dot_dimension_numbers<[1], [0], [0], [1], [0, 0, 1, 1], [], []>} : vector<8x4xf32>, vector<4x256xf32>, vector<8x256xf32> -> vector<8x256xf32>
    %40 = arith.addf %36, %39 : vector<8x256xf32>
    %c255_i32 = arith.constant 255 : i32
    %41 = tpu.dynamic_rotate %1 by %c255_i32 dim 1 : vector<4x256xf32>, i32 -> vector<4x256xf32>
    %c5 = arith.constant 5 : index
    %c0_29 = arith.constant 0 : index
    %c0_30 = arith.constant 0 : index
    %42 = vector.load %arg4[%c5, %c0_29, %c0_30] : memref<9x1x256xf32, #tpu.memory_space<vmem>>, vector<1x1x256xf32>
    %43 = vector.shape_cast %42 : vector<1x1x256xf32> to vector<1x256xf32>
    %44 = vector.broadcast %43 : vector<1x256xf32> to vector<4x256xf32>
    %45 = arith.mulf %41, %44 : vector<4x256xf32>
    %c5_31 = arith.constant 5 : index
    %c0_32 = arith.constant 0 : index
    %c0_33 = arith.constant 0 : index
    %46 = vector.load %arg3[%c5_31, %c0_32, %c0_33] : memref<9x8x4xf32, #tpu.memory_space<vmem>>, vector<1x8x4xf32>
    %47 = vector.shape_cast %46 : vector<1x8x4xf32> to vector<8x4xf32>
    %cst_34 = arith.constant dense<0.000000e+00> : vector<8x256xf32>
    %48 = tpu.matmul %47, %45, %cst_34 {dimension_numbers = #tpu.dot_dimension_numbers<[1], [0], [0], [1], [0, 0, 1, 1], [], []>} : vector<8x4xf32>, vector<4x256xf32>, vector<8x256xf32> -> vector<8x256xf32>
    %49 = arith.addf %40, %48 : vector<8x256xf32>
    %c241_i32 = arith.constant 241 : i32
    %50 = tpu.dynamic_rotate %1 by %c241_i32 dim 1 : vector<4x256xf32>, i32 -> vector<4x256xf32>
    %c6 = arith.constant 6 : index
    %c0_35 = arith.constant 0 : index
    %c0_36 = arith.constant 0 : index
    %51 = vector.load %arg4[%c6, %c0_35, %c0_36] : memref<9x1x256xf32, #tpu.memory_space<vmem>>, vector<1x1x256xf32>
    %52 = vector.shape_cast %51 : vector<1x1x256xf32> to vector<1x256xf32>
    %53 = vector.broadcast %52 : vector<1x256xf32> to vector<4x256xf32>
    %54 = arith.mulf %50, %53 : vector<4x256xf32>
    %c6_37 = arith.constant 6 : index
    %c0_38 = arith.constant 0 : index
    %c0_39 = arith.constant 0 : index
    %55 = vector.load %arg3[%c6_37, %c0_38, %c0_39] : memref<9x8x4xf32, #tpu.memory_space<vmem>>, vector<1x8x4xf32>
    %56 = vector.shape_cast %55 : vector<1x8x4xf32> to vector<8x4xf32>
    %cst_40 = arith.constant dense<0.000000e+00> : vector<8x256xf32>
    %57 = tpu.matmul %56, %54, %cst_40 {dimension_numbers = #tpu.dot_dimension_numbers<[1], [0], [0], [1], [0, 0, 1, 1], [], []>} : vector<8x4xf32>, vector<4x256xf32>, vector<8x256xf32> -> vector<8x256xf32>
    %58 = arith.addf %49, %57 : vector<8x256xf32>
    %c240_i32 = arith.constant 240 : i32
    %59 = tpu.dynamic_rotate %1 by %c240_i32 dim 1 : vector<4x256xf32>, i32 -> vector<4x256xf32>
    %c7 = arith.constant 7 : index
    %c0_41 = arith.constant 0 : index
    %c0_42 = arith.constant 0 : index
    %60 = vector.load %arg4[%c7, %c0_41, %c0_42] : memref<9x1x256xf32, #tpu.memory_space<vmem>>, vector<1x1x256xf32>
    %61 = vector.shape_cast %60 : vector<1x1x256xf32> to vector<1x256xf32>
    %62 = vector.broadcast %61 : vector<1x256xf32> to vector<4x256xf32>
    %63 = arith.mulf %59, %62 : vector<4x256xf32>
    %c7_43 = arith.constant 7 : index
    %c0_44 = arith.constant 0 : index
    %c0_45 = arith.constant 0 : index
    %64 = vector.load %arg3[%c7_43, %c0_44, %c0_45] : memref<9x8x4xf32, #tpu.memory_space<vmem>>, vector<1x8x4xf32>
    %65 = vector.shape_cast %64 : vector<1x8x4xf32> to vector<8x4xf32>
    %cst_46 = arith.constant dense<0.000000e+00> : vector<8x256xf32>
    %66 = tpu.matmul %65, %63, %cst_46 {dimension_numbers = #tpu.dot_dimension_numbers<[1], [0], [0], [1], [0, 0, 1, 1], [], []>} : vector<8x4xf32>, vector<4x256xf32>, vector<8x256xf32> -> vector<8x256xf32>
    %67 = arith.addf %58, %66 : vector<8x256xf32>
    %c239_i32 = arith.constant 239 : i32
    %68 = tpu.dynamic_rotate %1 by %c239_i32 dim 1 : vector<4x256xf32>, i32 -> vector<4x256xf32>
    %c8 = arith.constant 8 : index
    %c0_47 = arith.constant 0 : index
    %c0_48 = arith.constant 0 : index
    %69 = vector.load %arg4[%c8, %c0_47, %c0_48] : memref<9x1x256xf32, #tpu.memory_space<vmem>>, vector<1x1x256xf32>
    %70 = vector.shape_cast %69 : vector<1x1x256xf32> to vector<1x256xf32>
    %71 = vector.broadcast %70 : vector<1x256xf32> to vector<4x256xf32>
    %72 = arith.mulf %68, %71 : vector<4x256xf32>
    %c8_49 = arith.constant 8 : index
    %c0_50 = arith.constant 0 : index
    %c0_51 = arith.constant 0 : index
    %73 = vector.load %arg3[%c8_49, %c0_50, %c0_51] : memref<9x8x4xf32, #tpu.memory_space<vmem>>, vector<1x8x4xf32>
    %74 = vector.shape_cast %73 : vector<1x8x4xf32> to vector<8x4xf32>
    %cst_52 = arith.constant dense<0.000000e+00> : vector<8x256xf32>
    %75 = tpu.matmul %74, %72, %cst_52 {dimension_numbers = #tpu.dot_dimension_numbers<[1], [0], [0], [1], [0, 0, 1, 1], [], []>} : vector<8x4xf32>, vector<4x256xf32>, vector<8x256xf32> -> vector<8x256xf32>
    %76 = arith.addf %67, %75 : vector<8x256xf32>
    %c0_53 = arith.constant 0 : index
    %c0_54 = arith.constant 0 : index
    %c0_55 = arith.constant 0 : index
    %77 = vector.load %arg5[%c0_53, %c0_54, %c0_55] : memref<1x8x256xf32, #tpu.memory_space<vmem>>, vector<1x8x256xf32>
    %78 = vector.shape_cast %77 : vector<1x8x256xf32> to vector<8x256xf32>
    %79 = vector.shape_cast %76 : vector<8x256xf32> to vector<1x8x256xf32>
    tpu.vector_store %arg5[%c0_53, %c0_54, %c0_55], %79 {strides = array<i32>} : memref<1x8x256xf32, #tpu.memory_space<vmem>>, vector<1x8x256xf32>,
    return
  }
  func.func @transform_0(%arg0: i32, %arg1: i32) -> (i32, i32, i32) {
    %c0_i32 = arith.constant 0 : i32
    %c0_i32_0 = arith.constant 0 : i32
    %c0_i32_1 = arith.constant 0 : i32
    return %arg0, %c0_i32, %c0_i32_0 : i32, i32, i32
  }
  func.func @transform_1(%arg0: i32, %arg1: i32) -> (i32, i32, i32) {
    %c0_i32 = arith.constant 0 : i32
    %c0_i32_0 = arith.constant 0 : i32
    %c0_i32_1 = arith.constant 0 : i32
    return %c0_i32, %arg1, %c0_i32_0 : i32, i32, i32
  }
  func.func @transform_2(%arg0: i32, %arg1: i32) -> (i32, i32, i32) {
    %c0_i32 = arith.constant 0 : i32
    %c0_i32_0 = arith.constant 0 : i32
    %c0_i32_1 = arith.constant 0 : i32
    %c0_i32_2 = arith.constant 0 : i32
    return %c0_i32, %c0_i32_0, %c0_i32_1 : i32, i32, i32
  }
  func.func @transform_3(%arg0: i32, %arg1: i32) -> (i32, i32, i32) {
    %c0_i32 = arith.constant 0 : i32
    %c0_i32_0 = arith.constant 0 : i32
    return %arg0, %arg1, %c0_i32 : i32, i32, i32
  }
}

</mosaic_0001>

<bundles_post_ra>
// kernel: tpu_custom_call.1
= control target key start
LH: loop header
LB: loop body
LE: loop exit
PB: predicated region body
PF: predicated region fallthrough
CT: control target
= control target key end

     0   :  { %8 = vsyncpa [#allocation3], 0  ;;  %s1719_s0 = inlined_call_operand.vmem [shape: f32[2,4,256], index: 0, kind: input, shape index: {}]   ;;  %s1720_s1 = inlined_call_operand.vmem [shape: f32[9,8,4], index: 1, kind: input, shape index: {}]   ;;  %s1721_s2 = inlined_call_operand.vmem [shape: f32[9,1,256], index: 2, kind: input, shape index: {}]   ;;  %s1722_s3 = inlined_call_operand.hbm [shape: f32[2,8,256], index: 3, kind: output, shape index: {}]  }
   0x1   :  { %10 = vsyncpa [#allocation3 + $0x1], 0  ;;  %s1467_s12 = smov 0   ;;  %s1469_s13 = smov 0  }
   0x2   :  { %s1471_s14 = smov 0   ;;  %s1473_s15 = smov 0  }
   0x3   :  { %s1475_s16 = smov 0   ;;  %s1477_s17 = smov 0  }
   0x4 LB: > { %s1236_s18 = sadd.s32 4294967295, %s1435_s17   ;;  %s1237_s19 = sadd.s32 4294967294, %s1435_s17   ;;  %s1435_s17 = sphi %s1477_s17, %s16_s17   ;;  %s1431_s16 = sphi %s1475_s16, %s1729_s16   ;;  %s1427_s15 = sphi %s1473_s15, %s1728_s15   ;;  %s1423_s14 = sphi %s1471_s14, %s1727_s14   ;;  %s1419_s13 = sphi %s1469_s13, %s1726_s13   ;;  %s1415_s12 = sphi %s1467_s12, %s1725_s12  }
   0x5   : > { %s28_s20 = sadd.s32 1, %s1431_s16  ;;  %s110_s21 = sadd.s32 1, %s1423_s14 }
   0x6   : > { %p30_p0 = scmp.ge.s32.totalorder %s28_s20, 2  ;;  %p120_p1 = scmp.ne.s32.totalorder %s1423_s14, %s1419_s13 }
   0x7   : > { %p121_p2 = scmp.eq.s32.totalorder %s1236_s18, 1  ;;  %p126_p3 = scmp.ne.s32.totalorder %s1419_s13, %s1415_s12 }
   0x8   : > { %s1731_s20 = smov (%p30_p0, %s28_s20), 0  ;;  %p127_p5 = scmp.eq.s32.totalorder %s1237_s19, 1 }
   0x9   : > { %p1507_p4 = por %p121_p2, %p120_p1  ;;  %s105_s23 = ssub.s32 %s1431_s16, %s1731_s20 }
   0xa   : > { %p1241_p6 = scmp.ge.s32.totalorder %s1435_s17, 1  ;;  %p108_p7 = scmp.eq.s32.totalorder %s105_s23, 0 }
   0xb   : > { %p1514_p8 = por %p127_p5, %p126_p3  ;;  %p163_p9 = scmp.lt.s32.totalorder %s1435_s17, 3 }
   0xc   : > { %s1520_s25 = scalar_select %p108_p7, %s1423_s14, %s110_s21  }
   0xd   : > { %p164_p10 = pnand %p1241_p6, %p163_p9 }
   0xe   : > { %p191_p11 = scmp.lt.s32.totalorder (!%p164_p10), %s1427_s15, 1  ;;  %s1438_s4 = smov (!%p164_p10), 17  }
   0xf   : > { %167 = sbr.rel (%p164_p10) target bundleno = 383 (0x17f), region = 32  ;;  %s1439_s5 = smov (!%p164_p10), 16  }
  0x10   : > { %s1440_s6 = smov (!%p164_p10), 15   ;;  %s1441_s7 = smov (!%p164_p10), 1  }
  0x11   : > { %s1442_s8 = smov (!%p164_p10), 127   ;;  %s1443_s9 = smov (!%p164_p10), 113  }
  0x12   : > { %s1444_s10 = smov (!%p164_p10), 112   ;;  %s1445_s11 = smov (!%p164_p10), 111  }
  0x13   : > { %s188_s18 = sand.u32 (!%p164_p10), 1, %s1419_s13   ;;  %s1293_s21 = sshll.u32 (!%p164_p10), %s1427_s15, 8 }
  0x14   : > { %s192_s26 = scalar_select %p191_p11, %s1427_s15, 1  ;;  %v1437_v1 = vmov 0.0   ;;  %v208_v3 = vlaneseq  ;;  %v213_v8 = vld [vmem:[%s1721_s2] sm:$0x3]  ;;  %v1245_v13 = vld [vmem:[%s1721_s2 + $0x2] sm:$0x3] }
  0x15   : > { %327 = vmatprep.mubr.f32.mxu0 %v1437_v1  ;;  %407 = vmatprep.mubr.f32.mxu1 %v1437_v1  ;;  %vm256_vm1 = vcmask 1043456   ;;  %v1253_v18 = vld [vmem:[%s1721_s2 + $0x4] sm:$0x3]  ;;  %v1258_v23 = vld [vmem:[%s1721_s2 + $0x6] sm:$0x3]  ;;  %vm252_vm5 = vcmask 31744   ;;  %s1149_s29 = scalar_lea.hbm %s1722_s3, %s1293_s21 }
  0x16   : > { %s1292_s27 = sshll.u32 %s192_s26, 3  ;;  %v216_v4 = vshrl.u32 %v208_v3, 7  ;;  %v1551_v5 = vand.u32 127, %v208_v3  ;;  %v227_v24 = vld [vmem:[%s1720_s1] sm:$0xff]  ;;  %v1267_v37 = vld [vmem:[%s1721_s2 + $0xa] sm:$0x3] }
  0x17   : > { %s195_s30 = scalar_lea.vmem %s1719_s0, %s1292_s27  ;;  %v1246_v38 = vld [vmem:[%s1720_s1 + $0x8] sm:$0xff]  ;;  %v1254_v50 = vld [vmem:[%s1720_s1 + $0x10] sm:$0xff]  ;;  %v1259_v51 = vld [vmem:[%s1720_s1 + $0x18] sm:$0xff]  ;;  %s1242_s19 = sshll.u32 %s188_s18, 4 }
  0x18   : > { %v1527_v0 = vld [vmem:[%s195_s30] sm:$0xff]  ;;  %v1553_v6 = vsub.s32 0, %v216_v4  ;;  %v1555_v7 = vsub.s32 1, %v216_v4  ;;  %vm210_vm0 = vcmp.lt.s32.totalorder %v1551_v5, 17  ;;  %vm418_vm2 = vcmp.lt.s32.totalorder %v1551_v5, 15  ;;  %v1268_v62 = vld [vmem:[%s1720_s1 + $0x28] sm:$0xff] }
  0x19   : > { %204 = vrot.lane.b32.xlu1 %v1527_v0, %s1438_s4  ;;  %228 = vrot.lane.b32.xlu0 %v1527_v0, %s1439_s5  ;;  %v1534_v2 = vcombine.high %v1527_v0, %v1527_v0  ;;  %vm232_vm3 = vcmp.lt.s32.totalorder %v1551_v5, 16  ;;  %vm524_vm4 = vcmp.lt.s32.totalorder %v1551_v5, 1  ;;  %vm712_vm6 = vcmp.lt.s32.totalorder %v1551_v5, 127  ;;  %v1272_v49 = vld [vmem:[%s1721_s2 + $0xc] sm:$0x3]  ;;  %v1263_v61 = vld [vmem:[%s1720_s1 + $0x20] sm:$0xff] }
  0x1a   : > { %v218_v11 = vrot.slane %v213_v8, %v1553_v6  ;;  %v222_v12 = vrot.slane %v213_v8, %v1555_v7  ;;  %v241_v21 = vrot.slane %v1245_v13, %v1553_v6  ;;  %v245_v22 = vrot.slane %v1245_v13, %v1555_v7  ;;  %v1277_v60 = vld [vmem:[%s1721_s2 + $0xe] sm:$0x3]  ;;  %s190_s23 = scalar_lea.vmem [#allocation2], %s1242_s19  ;;  %s1135_s30 = scalar_lea.sflag [#allocation3], %s188_s18 }
  0x1b   : > { %v427_v25 = vrot.slane %v1253_v18, %v1553_v6  ;;  %v431_v26 = vrot.slane %v1253_v18, %v1555_v7  ;;  %v533_v32 = vrot.slane %v1258_v23, %v1553_v6  ;;  %v537_v36 = vrot.slane %v1258_v23, %v1555_v7  ;;  %s1151_s26 = sshll.u32 %s190_s23, 4  ;;  %s1446_s15 = smov [#allocation2]   ;;  %s1152_s26 = int_to_ptr.vmem [resolvable:$true] %s1151_s26 }
  0x1c   : > { %v721_v45 = vrot.slane %v1267_v37, %v1553_v6  ;;  %v725_v48 = vrot.slane %v1267_v37, %v1555_v7  ;;  %v827_v56 = vrot.slane %v1272_v49, %v1553_v6  ;;  %vm818_vm7 = vcmp.lt.s32.totalorder %v1551_v5, 113 }
  0x1d   : > { %414 = vrot.lane.b32.xlu0 %v1527_v0, %s1440_s6  ;;  %206 = vrot.lane.b32.xlu1 %v1534_v2, %s1438_s4  ;;  %v831_v59 = vrot.slane %v1272_v49, %v1555_v7  ;;  %vm924_vm8 = vcmp.lt.s32.totalorder %v1551_v5, 112  ;;  %vm1030_vm9 = vcmp.lt.s32.totalorder %v1551_v5, 111  ;;  %s1359_s4 = scalar_lea.vmem %s1152_s26, 256 }
  0x1e   : > { %p1360_p12 = scmp.ne.s32.totalorder %s1152_s26, %s1359_s4 }
  0x20   : > { %p1361_p13 = pnand %p1360_p12, %p1507_p4 }
  0x21   : > { %416 = vrot.lane.b32.xlu1 %v1534_v2, %s1440_s6  ;;  %230 = vrot.lane.b32.xlu0 %v1534_v2, %s1439_s5  ;;  %s1363_s5 = sshll.u32 %s1446_s15, 4  ;;  %s1364_s5 = int_to_ptr.vmem [resolvable:$false] %s1363_s5 }
  0x22   : > { %p1362_p0 = pneg %p1361_p13  ;;  %s1365_s6 = scalar_lea.vmem %s1364_s5, 512 }
  0x23   : > { %p1366_p1 = scmp.lt.s32.totalorder %s1152_s26, %s1364_s5  ;;  %p1367_p2 = scmp.lt.s32.totalorder %s1365_s6, %s1359_s4 }
  0x25   : > { %522 = vrot.lane.b32.xlu1 %v1534_v2, %s1441_s7  ;;  %520 = vrot.lane.b32.xlu0 %v1527_v0, %s1441_s7  ;;  %p1368_p3 = por %p1367_p2, %p1366_p1 }
  0x27   : > { %p1369_p5 = pnand %p1368_p3, %p1362_p0 }
  0x29   : > { %710 = vrot.lane.b32.xlu1 %v1534_v2, %s1442_s8  ;;  %708 = vrot.lane.b32.xlu0 %v1527_v0, %s1442_s8 }
  0x2d   : > { %816 = vrot.lane.b32.xlu1 %v1534_v2, %s1443_s9  ;;  %814 = vrot.lane.b32.xlu0 %v1527_v0, %s1443_s9 }
  0x31   : > { %922 = vrot.lane.b32.xlu1 %v1534_v2, %s1444_s10  ;;  %920 = vrot.lane.b32.xlu0 %v1527_v0, %s1444_s10 }
  0x35   : > { %1028 = vrot.lane.b32.xlu1 %v1534_v2, %s1445_s11  ;;  %1026 = vrot.lane.b32.xlu0 %v1527_v0, %s1445_s11 }
  0x8b   : > { %v205_v9 = vpop.permute.xlu1 %204  ;;  %v229_v10 = vpop.permute.xlu0 %228 }
  0x8f   : > { %v415_v14 = vpop.permute.xlu0 %414  ;;  %v207_v15 = vpop.permute.xlu1 %206 }
  0x90   : > { %v211_v16 = vsel %vm210_vm0, %v205_v9, %v207_v15  ;;  %v212_v17 = vsel %vm210_vm0, %v207_v15, %v205_v9 }
  0x91   : > { %v225_v19 = vmul.f32 %v218_v11, %v212_v17  ;;  %v226_v20 = vmul.f32 %v222_v12, %v211_v16  ;;  %v1282_v11 = vld [vmem:[%s1721_s2 + $0x10] sm:$0x3] }
  0x92   : > { %v1273_v12 = vld [vmem:[%s1720_s1 + $0x30] sm:$0xff] }
  0x93   : > { %1250 = vmatprep.subr.msk.mxu1 %vm256_vm1, %v226_v20  ;;  %v417_v27 = vpop.permute.xlu1 %416  ;;  %v231_v28 = vpop.permute.xlu0 %230  ;;  %v1043_v20 = vrot.slane %v1282_v11, %v1555_v7 }
  0x94   : > { %v419_v29 = vsel %vm418_vm2, %v415_v14, %v417_v27  ;;  %v233_v30 = vsel %vm232_vm3, %v229_v10, %v231_v28  ;;  %v234_v31 = vsel %vm232_vm3, %v231_v28, %v229_v10  ;;  %1251 = vmatpush1.msk.msra.mxu1 %vm256_vm1, %v225_v19  ;;  %v420_v33 = vsel %vm418_vm2, %v417_v27, %v415_v14 }
  0x95   : > { %v248_v34 = vmul.f32 %v241_v21, %v234_v31  ;;  %v249_v35 = vmul.f32 %v245_v22, %v233_v30  ;;  %1252 = vmatmul.mubr.msk.f32.vlgmr.msra.gmra.mxu1 %vm252_vm5, %v227_v24  ;;  %v435_v39 = vmul.f32 %v431_v26, %v419_v29  ;;  %v434_v42 = vmul.f32 %v427_v25, %v420_v33  ;;  %v1278_v21 = vld [vmem:[%s1720_s1 + $0x38] sm:$0xff] }
  0x96   : > { %617 = vmatprep.mubr.f32.mxu1 %v1437_v1  ;;  %v937_v10 = vrot.slane %v1277_v60, %v1555_v7  ;;  %v1039_v19 = vrot.slane %v1282_v11, %v1553_v6  ;;  %v1283_v7 = vld [vmem:[%s1720_s1 + $0x40] sm:$0xff] }
  0x97   : > { %v523_v40 = vpop.permute.xlu1 %522  ;;  %1247 = vmatprep.subr.msk.mxu0 %vm256_vm1, %v249_v35  ;;  %v521_v41 = vpop.permute.xlu0 %520 }
  0x98   : > { %v525_v43 = vsel %vm524_vm4, %v521_v41, %v523_v40  ;;  %v526_v44 = vsel %vm524_vm4, %v523_v40, %v521_v41  ;;  %1248 = vmatpush1.msk.msra.mxu0 %vm256_vm1, %v248_v34 }
  0x99   : > { %v540_v46 = vmul.f32 %v533_v32, %v526_v44  ;;  %v541_v47 = vmul.f32 %v537_v36, %v525_v43  ;;  %1255 = vmatprep.subr.msk.mxu0 %vm256_vm1, %v435_v39  ;;  %1249 = vmatmul.mubr.msk.f32.vlgmr.msra.gmra.mxu0 %vm252_vm5, %v1246_v38 }
  0x9a   : > { %1256 = vmatpush1.msk.msra.mxu0 %vm256_vm1, %v434_v42  ;;  %511 = vmatprep.mubr.f32.mxu0 %v1437_v1 }
  0x9b   : > { %v711_v52 = vpop.permute.xlu1 %710  ;;  %1260 = vmatprep.subr.msk.mxu1 %vm256_vm1, %v541_v47  ;;  %v709_v53 = vpop.permute.xlu0 %708  ;;  %1264 = vmatprep.subr.msk.mxu0 %vm256_vm1, %v1534_v2 }
  0x9c   : > { %v713_v54 = vsel %vm712_vm6, %v709_v53, %v711_v52  ;;  %v714_v55 = vsel %vm712_vm6, %v711_v52, %v709_v53  ;;  %1261 = vmatpush1.msk.msra.mxu1 %vm256_vm1, %v540_v46 }
  0x9d   : > { %v728_v57 = vmul.f32 %v721_v45, %v713_v54  ;;  %v729_v58 = vmul.f32 %v725_v48, %v714_v55  ;;  %1257 = vmatmul.mubr.msk.f32.vlgmr.msra.gmra.mxu0 %vm252_vm5, %v1254_v50  ;;  %1262 = vmatmul.mubr.msk.f32.vlgmr.msra.gmra.mxu1 %vm252_vm5, %v1259_v51 }
  0x9e   : > { %1265 = vmatpush1.msk.msra.mxu0 %vm256_vm1, %v1527_v0  ;;  %699 = vmatprep.mubr.f32.mxu0 %v1437_v1  ;;  %v933_v0 = vrot.slane %v1277_v60, %v1553_v6 }
  0x9f   : > { %v817_v63 = vpop.permute.xlu1 %816  ;;  %1269 = vmatprep.subr.msk.mxu1 %vm256_vm1, %v729_v58  ;;  %v815_v2 = vpop.permute.xlu0 %814  ;;  %805 = vmatprep.mubr.f32.mxu1 %v1437_v1 }
  0xa0   : > { %v819_v3 = vsel %vm818_vm7, %v815_v2, %v817_v63  ;;  %v820_v4 = vsel %vm818_vm7, %v817_v63, %v815_v2  ;;  %1270 = vmatpush1.msk.msra.mxu1 %vm256_vm1, %v728_v57 }
  0xa1   : > { %v834_v8 = vmul.f32 %v827_v56, %v819_v3  ;;  %v835_v9 = vmul.f32 %v831_v59, %v820_v4  ;;  %1266 = vmatmul.mubr.msk.f32.vlgmr.msra.gmra.mxu0 %vm252_vm5, %v1263_v61  ;;  %1271 = vmatmul.mubr.msk.f32.vlgmr.msra.gmra.mxu1 %vm252_vm5, %v1268_v62 }
  0xa2   : > { %911 = vmatprep.mubr.f32.mxu0 %v1437_v1  ;;  %1017 = vmatprep.mubr.f32.mxu1 %v1437_v1 }
  0xa3   : > { %v923_v13 = vpop.permute.xlu1 %922  ;;  %1274 = vmatprep.subr.msk.mxu0 %vm256_vm1, %v835_v9  ;;  %v921_v14 = vpop.permute.xlu0 %920 }
  0xa4   : > { %v925_v15 = vsel %vm924_vm8, %v921_v14, %v923_v13  ;;  %v926_v16 = vsel %vm924_vm8, %v923_v13, %v921_v14  ;;  %1275 = vmatpush1.msk.msra.mxu0 %vm256_vm1, %v834_v8 }
  0xa5   : > { %v940_v17 = vmul.f32 %v933_v0, %v925_v15  ;;  %v941_v18 = vmul.f32 %v937_v10, %v926_v16  ;;  %1276 = vmatmul.mubr.msk.f32.vlgmr.msra.gmra.mxu0 %vm252_vm5, %v1273_v12 }
  0xa6   : > { %1123 = vmatprep.mubr.f32.mxu0 %v1437_v1 }
  0xa7   : > { %v1029_v22 = vpop.permute.xlu1 %1028  ;;  %1279 = vmatprep.subr.msk.mxu1 %vm256_vm1, %v941_v18  ;;  %v1027_v23 = vpop.permute.xlu0 %1026 }
  0xa8   : > { %v1031_v24 = vsel %vm1030_vm9, %v1027_v23, %v1029_v22  ;;  %v1032_v5 = vsel %vm1030_vm9, %v1029_v22, %v1027_v23  ;;  %1280 = vmatpush1.msk.msra.mxu1 %vm256_vm1, %v940_v17 }
  0xa9   : > { %v1046_v25 = vmul.f32 %v1039_v19, %v1031_v24  ;;  %v1047_v6 = vmul.f32 %v1043_v20, %v1032_v5  ;;  %1281 = vmatmul.mubr.msk.f32.vlgmr.msra.gmra.mxu1 %vm252_vm5, %v1278_v21 }
  0xab   : > { %1284 = vmatprep.subr.msk.mxu0 %vm256_vm1, %v1047_v6 }
  0xac   : > { %1285 = vmatpush1.msk.msra.mxu0 %vm256_vm1, %v1046_v25 }
  0xad   : > { %1286 = vmatmul.mubr.msk.f32.vlgmr.msra.gmra.mxu0 %vm252_vm5, %v1283_v7 }
 0x155   : > { %v409_v1 = vpop.f32.mrf.mxu1 }
 0x157   : > { %v411_v27 = vpop.f32.mrf.mxu1 }
 0x159   : > { %v329_v26 = vpop.f32.mrf.mxu0 }
 0x15a   : > { %v410_v28 = vadd.f32 %v409_v1, %v329_v26 }
 0x15b   : > { %v331_v29 = vpop.f32.mrf.mxu0 }
 0x15c   : > { %v412_v30 = vadd.f32 %v411_v27, %v331_v29 }
 0x15d   : > { %v513_v31 = vpop.f32.mrf.mxu0  ;;  %v619_v32 = vpop.f32.mrf.mxu1 }
 0x15e   : > { %v518_v33 = vadd.f32 %v513_v31, %v410_v28 }
 0x15f   : > { %v515_v34 = vpop.f32.mrf.mxu0  ;;  %v621_v35 = vpop.f32.mrf.mxu1 }
 0x160   : > { %v519_v36 = vadd.f32 %v515_v34, %v412_v30  ;;  %v624_v37 = vadd.f32 %v619_v32, %v518_v33 }
 0x161   : > { %v701_v38 = vpop.f32.mrf.mxu0  ;;  %v807_v39 = vpop.f32.mrf.mxu1 }
 0x162   : > { %v625_v40 = vadd.f32 %v621_v35, %v519_v36  ;;  %v706_v41 = vadd.f32 %v701_v38, %v624_v37 }
 0x163   : > { %v703_v42 = vpop.f32.mrf.mxu0  ;;  %v809_v45 = vpop.f32.mrf.mxu1 }
 0x164   : > { %v707_v43 = vadd.f32 %v703_v42, %v625_v40  ;;  %v812_v44 = vadd.f32 %v807_v39, %v706_v41 }
 0x165   : > { %v913_v46 = vpop.f32.mrf.mxu0 }
 0x166   : > { %v813_v47 = vadd.f32 %v809_v45, %v707_v43  ;;  %v918_v48 = vadd.f32 %v913_v46, %v812_v44 }
 0x167   : > { %v915_v49 = vpop.f32.mrf.mxu0 }
 0x168   : > { %v919_v52 = vadd.f32 %v915_v49, %v813_v47 }
 0x169   : > { %v1019_v50 = vpop.f32.mrf.mxu1 }
 0x16a   : > { %v1024_v53 = vadd.f32 %v1019_v50, %v918_v48 }
 0x16b   : > { %v1021_v51 = vpop.f32.mrf.mxu1 }
 0x16c   : > { %v1025_v55 = vadd.f32 %v1021_v51, %v919_v52 }
 0x16d   : > { %v1125_v54 = vpop.f32.mrf.mxu0 }
 0x16e   : > { %v1130_v56 = vadd.f32 %v1125_v54, %v1024_v53 }
 0x16f   : > { %v1127_v57 = vpop.f32.mrf.mxu0 }
 0x170   : > { %1132 = vst [vmem:[%s190_s23] sm:$0xff] %v1130_v56  ;;  %v1131_v58 = vadd.f32 %v1127_v57, %v1025_v55 }
 0x172   : > { %1133 = vst [vmem:[%s190_s23 + $0x8] sm:$0xff] %v1131_v58 }
 0x173   : > { %1372 = shalt.err (!%p1369_p5)
}
 0x174   : > { %s1373_s7 = scalar_lea.hbm %s1149_s29, 256  ;;  %s1377_s10 = scalar_lea.hbm %s1722_s3, 512 }
 0x175   : > { %p1374_p6 = scmp.ne.s32.totalorder %s1149_s29, %s1373_s7  ;;  %p1378_p10 = scmp.lt.s32.totalorder %s1149_s29, %s1722_s3 }
 0x176   : > { %p1379_p11 = scmp.lt.s32.totalorder %s1377_s10, %s1373_s7 }
 0x177   : > { %p1375_p7 = pnand %p1374_p6, %p1507_p4 }
 0x178   : > { %p1380_p12 = por %p1379_p11, %p1378_p10 }
 0x179   : > { %p1376_p9 = pneg %p1375_p7 }
 0x17b   : > { %p1381_p13 = pnand %p1380_p12, %p1376_p9 }
 0x17d   : > { %1384 = shalt.err (!%p1381_p13)
}
 0x17e   : > { %1294 = dma.vmem_to_hbm [thread:$0]  (%p1507_p4), %s1152_s26, 256, %s1149_s29, %s1135_s30  }
 0x17f PF: > { %p1300_p0 = scmp.ge.s32.totalorder %s1435_s17, 2  ;;  %s1163_s19 = sand.u32 1, %s1415_s12  }
 0x180   : > { %s1164_s21 = scalar_lea.sflag [#allocation3], %s1163_s19 }
 0x181   : > { %p1297_p1 = pnand %p1300_p0, %p1514_p8 }
 0x183   : > { %p1298_p2 = pneg %p1297_p1 }
 0x185   : > { %1410 = dma.done.wait (%p1298_p2), %s1164_s21, 256  }
 0x186   : > { %1412 = vsyncadd (%p1298_p2), %s1164_s21, 4294967040  ;;  %s16_s17 = sadd.s32 1, %s1435_s17   ;;  %s1725_s12 = smov %s1419_s13 }
 0x187   : > { %p13_p3 = scmp.ge.s32.totalorder %s16_s17, 4   ;;  %s1726_s13 = smov %s1423_s14 }
 0x188   : > { %s1727_s14 = smov %s1520_s25  ;;  %s1728_s15 = smov %s1431_s16 }
 0x189   : > { %s1729_s16 = smov %s1731_s20  ;;  %15 = sbr.rel (!%p13_p3) target bundleno = 4 (0x4), region = 85 }
 0x18e   :  { %1169 = vsyncpa [#allocation3], 1 }
 0x18f   :  { %1171 = vsyncpa [#allocation3 + $0x1], 1 }

</bundles_post_ra>
